<compile_context>
chip_gen: v5e
topology: v5e:2x2
jax: 0.10.0
libtpu: 0.0.40
codegen_flags: <defaults>
</compile_context>

<pallas_src>
import jax
import jax.numpy as jnp
from jax.experimental import pallas as pl
from jax.experimental.pallas import tpu as pltpu

BN_EPS = 1e-5


def _round_up(x, m):
    return (x + m - 1) // m * m


# --------------------------------------------------------------------------
# Kernel
# --------------------------------------------------------------------------
def _mf_kernel(uid_ref, iid_ref, ut_ref, it_ref, out_ref):
    """One batch tile.

    uid_ref / iid_ref : (1, TB)    int32  ids for this tile (batch on lanes)
    ut_ref            : (Da, NUp)  f32    user table^T  = [BN-folded emb | user_bias | 1 | 0-pad]
    it_ref            : (Da, NIp)  f32    item table^T  = [BN-folded emb | 1 | item_bias+gb | 0-pad]
    out_ref           : (1, TB)    f32    predictions (lane-dense row)
    """
    nu = ut_ref.shape[1]
    ni = it_ref.shape[1]
    tb = uid_ref.shape[1]

    uid = uid_ref[...]                                           # (1, TB)
    iid = iid_ref[...]

    # One-hot selection matrices: table row index on sublanes, batch on lanes.
    u_oh = jnp.where(jax.lax.broadcasted_iota(jnp.int32, (nu, tb), 0) == uid, 1.0, 0.0)
    i_oh = jnp.where(jax.lax.broadcasted_iota(jnp.int32, (ni, tb), 0) == iid, 1.0, 0.0)

    # In-kernel gather on the MXU: (Da, N) @ (N, TB) -> (Da, TB).
    ug = jnp.dot(ut_ref[...], u_oh, preferred_element_type=jnp.float32)
    ig = jnp.dot(it_ref[...], i_oh, preferred_element_type=jnp.float32)

    # Fused (user_emb . item_emb) + user_bias + item_bias + global_bias:
    # the bias terms ride in the two augmented columns of each table.
    out_ref[...] = jnp.sum(ug * ig, axis=0, keepdims=True)       # (1, TB), unmasked vst


# --------------------------------------------------------------------------
# Wrapper
# --------------------------------------------------------------------------
def _build_tables(params):
    """Fold eval-mode BatchNorm + all biases into transposed, padded f32 tables."""
    D = params["user_embedding"].shape[1]
    nu = params["user_embedding"].shape[0]
    ni = params["item_embedding"].shape[0]

    def fold(emb, gamma, beta, mean, var):
        scale = gamma.astype(jnp.float32) * jax.lax.rsqrt(var.astype(jnp.float32) + BN_EPS)
        shift = beta.astype(jnp.float32) - mean.astype(jnp.float32) * scale
        return emb.astype(jnp.float32) * scale[None, :] + shift[None, :]

    u = fold(params["user_embedding"], params["user_bn_gamma"], params["user_bn_beta"],
             params["user_bn_mean"], params["user_bn_var"])                      # (nu, D)
    it = fold(params["item_embedding"], params["item_bn_gamma"], params["item_bn_beta"],
              params["item_bn_mean"], params["item_bn_var"])                     # (ni, D)

    gb = params["global_bias"].astype(jnp.float32)[0]
    u_aug = jnp.concatenate(
        [u, params["user_bias"].astype(jnp.float32), jnp.ones((nu, 1), jnp.float32)], axis=1)
    i_aug = jnp.concatenate(
        [it, jnp.ones((ni, 1), jnp.float32),
         params["item_bias"].astype(jnp.float32) + gb], axis=1)                  # (ni, D+2)

    d_aug = _round_up(D + 2, 8)          # sublane-friendly; zero pad rows contribute 0
    nu_pad = _round_up(nu, 128)          # lane-friendly
    ni_pad = _round_up(ni, 128)
    ut = jnp.zeros((d_aug, nu_pad), jnp.float32).at[:D + 2, :nu].set(u_aug.T)
    itt = jnp.zeros((d_aug, ni_pad), jnp.float32).at[:D + 2, :ni].set(i_aug.T)
    return ut, itt


def _choose_tb(B, nu_pad, ni_pad, d_aug, *, max_tb=4096, target_steps=8,
               vmem_budget=8 * 1024 * 1024):
    """Pick the batch tile (lane) width with honest per-step VMEM accounting."""
    # f32 bytes per lane of batch per step (dominant terms):
    #   one-hot temps        : nu_pad + ni_pad sublanes
    #   gathered temps       : 2 * d_aug sublanes
    #   id tiles (int32, padded to 8 sublanes, double-buffered) : 2 * 8 * 2
    #   output tile (f32, padded to 8 sublanes, double-buffered) : 8 * 2
    per_lane_bytes = 4 * (nu_pad + ni_pad + 2 * d_aug + 2 * 8 * 2 + 8 * 2)
    cap = max(128, (vmem_budget // per_lane_bytes) // 128 * 128)
    tb = min(max_tb, cap)
    # Give the grid >= target_steps steps when the batch allows it (v7x: >=4/TC)
    # and keep batch padding to < 128 rows instead of up to TB-1.
    tb = min(tb, max(128, _round_up(pl.cdiv(B, target_steps), 128)))
    return tb


def matrix_factorization_forward(user_ids, item_ids, params, *, max_block=4096):
    """Forward pass of MatrixFactorizationModel (eval mode)."""
    B = int(user_ids.shape[0])

    ut, itt = _build_tables(params)                 # (Da, NUp), (Da, NIp) f32 (tiny)
    d_aug, nu_pad = ut.shape
    _, ni_pad = itt.shape

    TB = _choose_tb(B, nu_pad, ni_pad, d_aug, max_tb=max_block)
    Bp = _round_up(B, TB)

    # Pad ids with 0 (a valid row); padded predictions are sliced off below.
    uid = jnp.pad(user_ids.astype(jnp.int32), (0, Bp - B)).reshape(1, Bp)
    iid = jnp.pad(item_ids.astype(jnp.int32), (0, Bp - B)).reshape(1, Bp)

    ids_spec = pl.BlockSpec((1, TB), lambda i: (0, i))          # batch on lanes
    tab_u_spec = pl.BlockSpec((d_aug, nu_pad), lambda i: (0, 0))  # fetched once
    tab_i_spec = pl.BlockSpec((d_aug, ni_pad), lambda i: (0, 0))  # fetched once
    out_spec = pl.BlockSpec((1, TB), lambda i: (0, i))          # lane-dense output

    out = pl.pallas_call(
        _mf_kernel,
        out_shape=jax.ShapeDtypeStruct((1, Bp), jnp.float32),
        grid_spec=pltpu.PrefetchScalarGridSpec(
            num_scalar_prefetch=0,
            grid=(Bp // TB,),
            in_specs=[ids_spec, ids_spec, tab_u_spec, tab_i_spec],
            out_specs=out_spec,
        ),
        compiler_params=pltpu.CompilerParams(
            dimension_semantics=("parallel",),       # v7x: shard batch over 2 TCs
            vmem_limit_bytes=32 * 1024 * 1024,       # v5e scoped default is only 16 MiB
        ),
    )(uid, iid, ut, itt)

    return out[0, :B]                                # matches .squeeze() -> (B,)


# --------------------------------------------------------------------------
# Parameters (PyTorch-equivalent init) and pure-JAX reference
# --------------------------------------------------------------------------
def init_params(key, num_users, num_items, embedding_dim):
    ks = jax.random.split(key, 8)
    return {
        # nn.init.normal_(w, 0, 0.05)
        "user_embedding": 0.05 * jax.random.normal(ks[0], (num_users, embedding_dim), jnp.float32),
        "item_embedding": 0.05 * jax.random.normal(ks[1], (num_items, embedding_dim), jnp.float32),
        # biases init to zero
        "user_bias": jnp.zeros((num_users, 1), jnp.float32),
        "item_bias": jnp.zeros((num_items, 1), jnp.float32),
        "global_bias": jnp.zeros((1,), jnp.float32),
        # BatchNorm1d buffers/params (nontrivial values so the test is meaningful;
        # PyTorch defaults would be gamma=1, beta=0, mean=0, var=1)
        "user_bn_gamma": 1.0 + 0.1 * jax.random.normal(ks[2], (embedding_dim,), jnp.float32),
        "user_bn_beta": 0.1 * jax.random.normal(ks[3], (embedding_dim,), jnp.float32),
        "user_bn_mean": 0.05 * jax.random.normal(ks[4], (embedding_dim,), jnp.float32),
        "user_bn_var": 1.0 + 0.1 * jax.random.uniform(ks[5], (embedding_dim,), jnp.float32),
        "item_bn_gamma": 1.0 + 0.1 * jax.random.normal(ks[6], (embedding_dim,), jnp.float32),
        "item_bn_beta": 0.1 * jax.random.normal(ks[7], (embedding_dim,), jnp.float32),
        "item_bn_mean": 0.025 * jax.random.normal(ks[4], (embedding_dim,), jnp.float32),
        "item_bn_var": 1.0 + 0.05 * jax.random.uniform(ks[5], (embedding_dim,), jnp.float32),
    }


def _reference(user_ids, item_ids, p):
    ue = jnp.take(p["user_embedding"], user_ids, axis=0).astype(jnp.float32)
    ie = jnp.take(p["item_embedding"], item_ids, axis=0).astype(jnp.float32)
    ue = (ue - p["user_bn_mean"]) / jnp.sqrt(p["user_bn_var"] + BN_EPS) * p["user_bn_gamma"] + p["user_bn_beta"]
    ie = (ie - p["item_bn_mean"]) / jnp.sqrt(p["item_bn_var"] + BN_EPS) * p["item_bn_gamma"] + p["item_bn_beta"]
    pred = jnp.sum(ue * ie, axis=1)
    ub = jnp.take(p["user_bias"], user_ids, axis=0).squeeze(-1)
    ib = jnp.take(p["item_bias"], item_ids, axis=0).squeeze(-1)
    return pred + ub + ib + p["global_bias"][0]


if __name__ == "__main__":
    num_users, num_items, embedding_dim = 100, 200, 64

    key = jax.random.PRNGKey(0)
    params = init_params(jax.random.fold_in(key, 0), num_users, num_items, embedding_dim)

    # Small sanity batch + a multi-tile batch (exercises grid > 1 and padding).
    for batch in (8, 5000):
        ku, ki = jax.random.split(jax.random.fold_in(key, batch))
        user_ids = jax.random.randint(ku, (batch,), 0, num_users, dtype=jnp.int32)
        item_ids = jax.random.randint(ki, (batch,), 0, num_items, dtype=jnp.int32)

        preds = matrix_factorization_forward(user_ids, item_ids, params)
        jax.block_until_ready(preds)

        ref = _reference(user_ids, item_ids, params)
        assert preds.shape == (batch,), preds.shape
        assert jnp.allclose(preds, ref, atol=1e-4, rtol=1e-4), (batch, preds[:8], ref[:8])

    print("KERNEL_OK")
</pallas_src>

<mosaic_0001>
module attributes {stable_mosaic.version = 11 : i64} {
  func.func @_mf_kernel(%arg0: i32, %arg1: memref<1x128xi32, #tpu.memory_space<vmem>>, %arg2: memref<1x128xi32, #tpu.memory_space<vmem>>, %arg3: memref<72x128xf32, #tpu.memory_space<vmem>>, %arg4: memref<72x256xf32, #tpu.memory_space<vmem>>, %arg5: memref<1x128xf32, #tpu.memory_space<vmem>>) attributes {dimension_semantics = [#tpu.dimension_semantics<parallel>], iteration_bounds = array<i64: 1>, scalar_prefetch = 0 : i64, scratch_operands = 0 : i64, tpu.core_type = #tpu.core_type<tc>, window_params = [{transform_indices = @transform_0, window_bounds = array<i64: 1, 128>}, {transform_indices = @transform_1, window_bounds = array<i64: 1, 128>}, {pipeline_mode = #tpu.pipeline_mode<synchronous>, transform_indices = @transform_2, window_bounds = array<i64: 72, 128>}, {pipeline_mode = #tpu.pipeline_mode<synchronous>, transform_indices = @transform_3, window_bounds = array<i64: 72, 256>}, {transform_indices = @transform_4, window_bounds = array<i64: 1, 128>}]} {
    %c0 = arith.constant 0 : index
    %c0_0 = arith.constant 0 : index
    %0 = vector.load %arg1[%c0, %c0_0] : memref<1x128xi32, #tpu.memory_space<vmem>>, vector<1x128xi32>
    %c0_1 = arith.constant 0 : index
    %c0_2 = arith.constant 0 : index
    %1 = vector.load %arg2[%c0_1, %c0_2] : memref<1x128xi32, #tpu.memory_space<vmem>>, vector<1x128xi32>
    %2 = tpu.iota {dimensions = array<i32: 0>} : vector<128x128xi32>
    %3 = vector.broadcast %0 : vector<1x128xi32> to vector<128x128xi32>
    %4 = arith.cmpi eq, %2, %3 : vector<128x128xi32>
    %cst = arith.constant 1.000000e+00 : f32
    %cst_3 = arith.constant 0.000000e+00 : f32
    %5 = vector.broadcast %cst : f32 to vector<128x128xf32>
    %6 = vector.broadcast %cst_3 : f32 to vector<128x128xf32>
    %7 = arith.select %4, %5, %6 : vector<128x128xi1>, vector<128x128xf32>
    %8 = tpu.iota {dimensions = array<i32: 0>} : vector<256x128xi32>
    %9 = vector.broadcast %1 : vector<1x128xi32> to vector<256x128xi32>
    %10 = arith.cmpi eq, %8, %9 : vector<256x128xi32>
    %cst_4 = arith.constant 1.000000e+00 : f32
    %cst_5 = arith.constant 0.000000e+00 : f32
    %11 = vector.broadcast %cst_4 : f32 to vector<256x128xf32>
    %12 = vector.broadcast %cst_5 : f32 to vector<256x128xf32>
    %13 = arith.select %10, %11, %12 : vector<256x128xi1>, vector<256x128xf32>
    %c0_6 = arith.constant 0 : index
    %c0_7 = arith.constant 0 : index
    %14 = vector.load %arg3[%c0_6, %c0_7] : memref<72x128xf32, #tpu.memory_space<vmem>>, vector<72x128xf32>
    %cst_8 = arith.constant dense<0.000000e+00> : vector<72x128xf32>
    %15 = tpu.matmul %14, %7, %cst_8 {dimension_numbers = #tpu.dot_dimension_numbers<[1], [0], [0], [1], [0, 0, 1, 1], [], []>} : vector<72x128xf32>, vector<128x128xf32>, vector<72x128xf32> -> vector<72x128xf32>
    %c0_9 = arith.constant 0 : index
    %c0_10 = arith.constant 0 : index
    %16 = vector.load %arg4[%c0_9, %c0_10] : memref<72x256xf32, #tpu.memory_space<vmem>>, vector<72x256xf32>
    %cst_11 = arith.constant dense<0.000000e+00> : vector<72x128xf32>
    %17 = tpu.matmul %16, %13, %cst_11 {dimension_numbers = #tpu.dot_dimension_numbers<[1], [0], [0], [1], [0, 0, 1, 1], [], []>} : vector<72x256xf32>, vector<256x128xf32>, vector<72x128xf32> -> vector<72x128xf32>
    %18 = arith.mulf %15, %17 : vector<72x128xf32>
    %cst_12 = arith.constant dense<0.000000e+00> : vector<128xf32>
    %19 = vector.multi_reduction <add>, %18, %cst_12 [0] : vector<72x128xf32> to vector<128xf32>
    %20 = vector.shape_cast %19 : vector<128xf32> to vector<1x128xf32>
    %c0_13 = arith.constant 0 : index
    %c0_14 = arith.constant 0 : index
    %21 = vector.load %arg5[%c0_13, %c0_14] : memref<1x128xf32, #tpu.memory_space<vmem>>, vector<1x128xf32>
    tpu.vector_store %arg5[%c0_13, %c0_14], %20 {strides = array<i32>} : memref<1x128xf32, #tpu.memory_space<vmem>>, vector<1x128xf32>,
    return
  }
  func.func @transform_0(%arg0: i32) -> (i32, i32) {
    %c0_i32 = arith.constant 0 : i32
    %c0_i32_0 = arith.constant 0 : i32
    return %c0_i32, %arg0 : i32, i32
  }
  func.func @transform_1(%arg0: i32) -> (i32, i32) {
    %c0_i32 = arith.constant 0 : i32
    %c0_i32_0 = arith.constant 0 : i32
    return %c0_i32, %arg0 : i32, i32
  }
  func.func @transform_2(%arg0: i32) -> (i32, i32) {
    %c0_i32 = arith.constant 0 : i32
    %c0_i32_0 = arith.constant 0 : i32
    %c0_i32_1 = arith.constant 0 : i32
    return %c0_i32, %c0_i32_0 : i32, i32
  }
  func.func @transform_3(%arg0: i32) -> (i32, i32) {
    %c0_i32 = arith.constant 0 : i32
    %c0_i32_0 = arith.constant 0 : i32
    %c0_i32_1 = arith.constant 0 : i32
    return %c0_i32, %c0_i32_0 : i32, i32
  }
  func.func @transform_4(%arg0: i32) -> (i32, i32) {
    %c0_i32 = arith.constant 0 : i32
    %c0_i32_0 = arith.constant 0 : i32
    return %c0_i32, %arg0 : i32, i32
  }
}

</mosaic_0001>

<bundles_post_ra>
// kernel: tpu_custom_call.1
= control target key start
LH: loop header
LB: loop body
LE: loop exit
PB: predicated region body
PF: predicated region fallthrough
CT: control target
= control target key end

     0   :  { %9 = vsyncpa [#allocation3], 0  ;;  %s1101_s0 = inlined_call_operand.hbm [shape: s32[1,128], index: 0, kind: input, shape index: {}]   ;;  %s1102_s1 = inlined_call_operand.hbm [shape: s32[1,128], index: 1, kind: input, shape index: {}]   ;;  %s1103_s2 = inlined_call_operand.hbm [shape: f32[72,128], index: 2, kind: input, shape index: {}]   ;;  %s1104_s3 = inlined_call_operand.hbm [shape: f32[72,256], index: 3, kind: input, shape index: {}]   ;;  %s1105_s4 = inlined_call_operand.hbm [shape: f32[1,128], index: 4, kind: output, shape index: {}]  }
   0x1   :  { %10 = vsyncpa [#allocation6], 0 }
   0x2   :  { %11 = vsyncpa [#allocation9], 0  ;;  %s29_s17 = sshll.u32 %s1102_s1, 4  ;;  %s30_s17 = int_to_ptr.hbm [resolvable:$true] %s29_s17 }
   0x3   :  { %12 = vsyncpa [#allocation4], 0  ;;  %s632_s18 = smov [#allocation5]   ;;  %s18_s22 = sshll.u32 %s1101_s0, 4  ;;  %s19_s22 = int_to_ptr.hbm [resolvable:$true] %s18_s22 }
   0x4   :  { %s31_s19 = sshll.u32 %s632_s18, 4  ;;  %s633_s23 = smov [#allocation2]   ;;  %s32_s19 = int_to_ptr.vmem [resolvable:$true] %s31_s19 }
   0x5   :  { %34 = dma.hbm_to_vmem [thread:$0]  %s30_s17, 16, %s32_s19, [#allocation6]  }
   0x6   :  { %s20_s24 = sshll.u32 %s633_s23, 4  ;;  %s39_s27 = sshll.u32 %s1103_s2, 4  ;;  %s21_s24 = int_to_ptr.vmem [resolvable:$true] %s20_s24  ;;  %s40_s27 = int_to_ptr.hbm [resolvable:$true] %s39_s27 }
   0x7   :  { %23 = dma.hbm_to_vmem [thread:$0]  %s19_s22, 16, %s21_s24, [#allocation3]  }
   0x8   :  { %s634_s1 = smov [#allocation7]   ;;  %s52_s5 = sshll.u32 %s1104_s3, 4  ;;  %s53_s5 = int_to_ptr.hbm [resolvable:$true] %s52_s5 }
   0x9   :  { %s41_s28 = sshll.u32 %s634_s1, 4  ;;  %s635_s6 = smov 128   ;;  %s42_s28 = int_to_ptr.vmem [resolvable:$true] %s41_s28 }
   0xa   :  { %s636_s0 = smov 8   ;;  %s637_s7 = smov [#allocation8]  }
   0xb   :  { %47 = dma.hbm_to_vmem [thread:$0]  %s40_s27, 1152, %s42_s28, [#allocation6], %s635_s6, %s635_s6, %s636_s0  }
   0xc   :  { %s54_s8 = sshll.u32 %s637_s7, 4  ;;  %s638_s9 = smov 256   ;;  %s55_s8 = int_to_ptr.vmem [resolvable:$true] %s54_s8 }
   0xd   :  { %s639_s10 = smov 16  }
   0xe   :  { %60 = dma.hbm_to_vmem [thread:$0]  %s53_s5, 2304, %s55_s8, [#allocation9], %s638_s9, %s638_s9, %s639_s10  }
   0xf   :  { %624 = dma.done.wait [#allocation3], 16  }
  0x10   :  { %625 = vsyncadd [#allocation3], 4294967280 }
  0x11   :  { %626 = dma.done.wait [#allocation6], 1168  }
  0x12   :  { %627 = vsyncadd [#allocation6], 4294966128 }
  0x13   :  { %628 = dma.done.wait [#allocation9], 2304  }
  0x14   :  { %629 = vsyncadd [#allocation9], 4294964992  ;;  %v79_v0 = vlaneseq  ;;  %v693_v8 = vld [vmem:[#allocation5] ss:$0 sm:$0xff]  ;;  %v696_v10 = vld [vmem:[#allocation2] ss:$0 sm:$0xff] }
  0x15   :  { %v640_v12 = vmov 1.0   ;;  %v264_v36 = vld [vmem:[#allocation8 + $0x8] sm:$0xff]  ;;  %v263_v37 = vld [vmem:[#allocation8] sm:$0xff]  ;;  %v210_v38 = vld [vmem:[#allocation7] sm:$0xff]  ;;  %s641_s2 = smov [#allocation10]   ;;  %s400_s13 = sshll.u32 %s1105_s4, 4  ;;  %s401_s13 = int_to_ptr.hbm [resolvable:$true] %s400_s13 }
  0x16   :  { %v679_v1 = vshrl.u32 %v79_v0, 7  ;;  %v266_v39 = vld [vmem:[#allocation8 + $0x18] sm:$0xff]  ;;  %v265_v40 = vld [vmem:[#allocation8 + $0x10] sm:$0xff]  ;;  %v211_v41 = vld [vmem:[#allocation7 + $0x8] sm:$0xff]  ;;  %s398_s3 = sshll.u32 %s641_s2, 4  ;;  %s399_s3 = int_to_ptr.vmem [resolvable:$true] %s398_s3 }
  0x17   :  { %v217_v42 = vld [vmem:[#allocation7 + $0x38] sm:$0xff]  ;;  %v268_v43 = vld [vmem:[#allocation8 + $0x28] sm:$0xff]  ;;  %v267_v44 = vld [vmem:[#allocation8 + $0x20] sm:$0xff] }
  0x18   :  { %v144_v2 = vadd.s32 248, %v679_v1  ;;  %v143_v3 = vadd.s32 240, %v679_v1  ;;  %v684_v4 = vadd.s32 120, %v679_v1  ;;  %v142_v5 = vadd.s32 232, %v679_v1  ;;  %v212_v45 = vld [vmem:[#allocation7 + $0x10] sm:$0xff]  ;;  %v218_v46 = vld [vmem:[#allocation7 + $0x40] sm:$0xff] }
  0x19   :  { %v688_v6 = vadd.s32 112, %v679_v1  ;;  %v691_v7 = vadd.s32 104, %v679_v1  ;;  %v141_v9 = vadd.s32 224, %v679_v1  ;;  %v703_v11 = vadd.s32 96, %v679_v1  ;;  %v270_v47 = vld [vmem:[#allocation8 + $0x38] sm:$0xff]  ;;  %v269_v48 = vld [vmem:[#allocation8 + $0x30] sm:$0xff] }
  0x1a   :  { %vm177_vm0 = vcmp.eq.s32.totalorder %v144_v2, %v693_v8  ;;  %vm176_vm1 = vcmp.eq.s32.totalorder %v143_v3, %v693_v8  ;;  %vm161_vm2 = vcmp.eq.s32.totalorder %v684_v4, %v693_v8  ;;  %vm112_vm3 = vcmp.eq.s32.totalorder %v684_v4, %v696_v10  ;;  %v213_v49 = vld [vmem:[#allocation7 + $0x18] sm:$0xff]  ;;  %v272_v50 = vld [vmem:[#allocation8 + $0x48] sm:$0xff]  ;;  %v271_v51 = vld [vmem:[#allocation8 + $0x40] sm:$0xff] }
  0x1b   :  { %444 = vmatpush.msk.msra.mxu2 %vm177_vm0, %v640_v12  ;;  %428 = vmatpush.msk.msra.mxu1 %vm161_vm2, %v640_v12  ;;  %vm160_vm4 = vcmp.eq.s32.totalorder %v688_v6, %v693_v8  ;;  %v140_v13 = vadd.s32 216, %v679_v1  ;;  %vm175_vm5 = vcmp.eq.s32.totalorder %v142_v5, %v693_v8  ;;  %vm111_vm6 = vcmp.eq.s32.totalorder %v688_v6, %v696_v10  ;;  %v214_v52 = vld [vmem:[#allocation7 + $0x20] sm:$0xff]  ;;  %v273_v54 = vld [vmem:[#allocation8 + $0x50] sm:$0xff]  ;;  %v215_v55 = vld [vmem:[#allocation7 + $0x28] sm:$0xff] }
  0x1c   :  { %412 = vmatpush.msk.msra.mxu0 %vm112_vm3, %v640_v12  ;;  %vm159_vm7 = vcmp.eq.s32.totalorder %v691_v7, %v693_v8  ;;  %v725_v14 = vadd.s32 88, %v679_v1  ;;  %vm110_vm8 = vcmp.eq.s32.totalorder %v691_v7, %v696_v10  ;;  %vm174_vm9 = vcmp.eq.s32.totalorder %v141_v9, %v693_v8  ;;  %460 = vmatpush.msk.msra.mxu3 %vm112_vm3, %v640_v12  ;;  %v274_v53 = vld [vmem:[#allocation8 + $0x58] sm:$0xff]  ;;  %v279_v56 = vld [vmem:[#allocation8 + $0x80] sm:$0xff]  ;;  %v276_v57 = vld [vmem:[#allocation8 + $0x68] sm:$0xff] }
  0x1d   :  { %445 = vmatpush.msk.msra.mxu2 %vm176_vm1, %v640_v12  ;;  %429 = vmatpush.msk.msra.mxu1 %vm160_vm4, %v640_v12  ;;  %v139_v15 = vadd.s32 208, %v679_v1  ;;  %vm1110_vm10 = vcmp.eq.s32.totalorder %v703_v11, %v693_v8  ;;  %v743_v16 = vadd.s32 80, %v679_v1  ;;  %vm109_vm11 = vcmp.eq.s32.totalorder %v703_v11, %v696_v10  ;;  %v275_v58 = vld [vmem:[#allocation8 + $0x60] sm:$0xff]  ;;  %v216_v59 = vld [vmem:[#allocation7 + $0x30] sm:$0xff]  ;;  %v278_v60 = vld [vmem:[#allocation8 + $0x78] sm:$0xff] }
  0x1e   :  { %413 = vmatpush.msk.msra.mxu0 %vm111_vm6, %v640_v12  ;;  %vm173_vm12 = vcmp.eq.s32.totalorder %v140_v13, %v693_v8  ;;  %v138_v17 = vadd.s32 200, %v679_v1  ;;  %vm1107_vm13 = vcmp.eq.s32.totalorder %v725_v14, %v693_v8  ;;  %v761_v18 = vadd.s32 72, %v679_v1  ;;  %461 = vmatpush.msk.msra.mxu3 %vm111_vm6, %v640_v12  ;;  %v277_v61 = vld [vmem:[#allocation8 + $0x70] sm:$0xff]  ;;  %v280_v62 = vld [vmem:[#allocation8 + $0x88] sm:$0xff] }
  0x1f   :  { %446 = vmatpush.msk.msra.mxu2 %vm175_vm5, %v640_v12  ;;  %430 = vmatpush.msk.msra.mxu1 %vm159_vm7, %v640_v12  ;;  %vm108_vm14 = vcmp.eq.s32.totalorder %v725_v14, %v696_v10  ;;  %vm172_vm15 = vcmp.eq.s32.totalorder %v139_v15, %v693_v8  ;;  %v137_v19 = vadd.s32 192, %v679_v1  ;;  %vm1106_vm0 = vcmp.eq.s32.totalorder %v743_v16, %v693_v8 }
  0x20   :  { %414 = vmatpush.msk.msra.mxu0 %vm110_vm8, %v640_v12  ;;  %v779_v20 = vadd.s32 64, %v679_v1  ;;  %vm107_vm1 = vcmp.eq.s32.totalorder %v743_v16, %v696_v10  ;;  %vm171_vm5 = vcmp.eq.s32.totalorder %v138_v17, %v693_v8  ;;  %v136_v21 = vadd.s32 184, %v679_v1  ;;  %462 = vmatpush.msk.msra.mxu3 %vm110_vm8, %v640_v12 }
  0x21   :  { %447 = vmatpush.msk.msra.mxu2 %vm174_vm9, %v640_v12  ;;  %431 = vmatpush.msk.msra.mxu1 %vm1110_vm10, %v640_v12  ;;  %vm1108_vm3 = vcmp.eq.s32.totalorder %v761_v18, %v693_v8  ;;  %v801_v22 = vadd.s32 56, %v679_v1  ;;  %vm106_vm9 = vcmp.eq.s32.totalorder %v761_v18, %v696_v10  ;;  %v135_v23 = vadd.s32 176, %v679_v1 }
  0x22   :  { %415 = vmatpush.msk.msra.mxu0 %vm109_vm11, %v640_v12  ;;  %v819_v24 = vadd.s32 48, %v679_v1  ;;  %v134_v25 = vadd.s32 168, %v679_v1  ;;  %v841_v26 = vadd.s32 40, %v679_v1  ;;  %v133_v27 = vadd.s32 160, %v679_v1  ;;  %463 = vmatpush.msk.msra.mxu3 %vm109_vm11, %v640_v12 }
  0x23   :  { %448 = vmatpush.msk.msra.mxu2 %vm173_vm12, %v640_v12  ;;  %432 = vmatpush.msk.msra.mxu1 %vm1107_vm13, %v640_v12  ;;  %vm170_vm12 = vcmp.eq.s32.totalorder %v137_v19, %v693_v8  ;;  %vm169_vm13 = vcmp.eq.s32.totalorder %v136_v21, %v693_v8  ;;  %vm1111_vm6 = vcmp.eq.s32.totalorder %v801_v22, %v693_v8  ;;  %v859_v28 = vadd.s32 32, %v679_v1 }
  0x24   :  { %416 = vmatpush.msk.msra.mxu0 %vm108_vm14, %v640_v12  ;;  %vm167_vm10 = vcmp.eq.s32.totalorder %v134_v25, %v693_v8  ;;  %v132_v29 = vadd.s32 152, %v679_v1  ;;  %vm1113_vm8 = vcmp.eq.s32.totalorder %v841_v26, %v693_v8  ;;  %v881_v30 = vadd.s32 24, %v679_v1  ;;  %464 = vmatpush.msk.msra.mxu3 %vm108_vm14, %v640_v12 }
  0x25   :  { %449 = vmatpush.msk.msra.mxu2 %vm172_vm15, %v640_v12  ;;  %433 = vmatpush.msk.msra.mxu1 %vm1106_vm0, %v640_v12  ;;  %vm1109_vm15 = vcmp.eq.s32.totalorder %v779_v20, %v693_v8  ;;  %vm105_vm0 = vcmp.eq.s32.totalorder %v779_v20, %v696_v10  ;;  %v131_v31 = vadd.s32 144, %v679_v1  ;;  %vm1114_vm11 = vcmp.eq.s32.totalorder %v859_v28, %v693_v8 }
  0x26   :  { %417 = vmatpush.msk.msra.mxu0 %vm107_vm1, %v640_v12  ;;  %v903_v32 = vadd.s32 16, %v679_v1  ;;  %v130_v33 = vadd.s32 136, %v679_v1  ;;  %v925_v34 = vadd.s32 8, %v679_v1  ;;  %465 = vmatpush.msk.msra.mxu3 %vm107_vm1, %v640_v12  ;;  %vm100_vm14 = vcmp.eq.s32.totalorder %v881_v30, %v696_v10 }
  0x27   :  { %450 = vmatpush.msk.msra.mxu2 %vm171_vm5, %v640_v12  ;;  %434 = vmatpush.msk.msra.mxu1 %vm1108_vm3, %v640_v12  ;;  %vm104_vm5 = vcmp.eq.s32.totalorder %v801_v22, %v696_v10  ;;  %vm168_vm3 = vcmp.eq.s32.totalorder %v135_v23, %v693_v8  ;;  %v129_v35 = vadd.s32 128, %v679_v1 }
  0x28   :  { %418 = vmatpush.msk.msra.mxu0 %vm106_vm9, %v640_v12  ;;  %vm148_vm1 = vcmp.eq.s32.totalorder %v903_v32, %v693_v8  ;;  %466 = vmatpush.msk.msra.mxu3 %vm106_vm9, %v640_v12  ;;  %vm147_vm9 = vcmp.eq.s32.totalorder %v925_v34, %v693_v8 }
  0x29   :  { %451 = vmatpush.msk.msra.mxu2 %vm170_vm12, %v640_v12  ;;  %435 = vmatpush.msk.msra.mxu1 %vm1109_vm15, %v640_v12  ;;  %vm1112_vm12 = vcmp.eq.s32.totalorder %v819_v24, %v693_v8  ;;  %vm103_vm15 = vcmp.eq.s32.totalorder %v819_v24, %v696_v10 }
  0x2a   :  { %419 = vmatpush.msk.msra.mxu0 %vm105_vm0, %v640_v12  ;;  %467 = vmatpush.msk.msra.mxu3 %vm105_vm0, %v640_v12  ;;  %vm146_vm0 = vcmp.eq.s32.totalorder %v679_v1, %v693_v8 }
  0x2b   :  { %452 = vmatpush.msk.msra.mxu2 %vm169_vm13, %v640_v12  ;;  %436 = vmatpush.msk.msra.mxu1 %vm1111_vm6, %v640_v12  ;;  %vm102_vm13 = vcmp.eq.s32.totalorder %v841_v26, %v696_v10  ;;  %vm166_vm6 = vcmp.eq.s32.totalorder %v133_v27, %v693_v8 }
  0x2c   :  { %420 = vmatpush.msk.msra.mxu0 %vm104_vm5, %v640_v12  ;;  %468 = vmatpush.msk.msra.mxu3 %vm104_vm5, %v640_v12  ;;  %vm1120_vm5 = vcmp.eq.s32.totalorder %v779_v20, %v693_v8 }
  0x2d   :  { %453 = vmatpush.msk.msra.mxu2 %vm168_vm3, %v640_v12  ;;  %437 = vmatpush.msk.msra.mxu1 %vm1112_vm12, %v640_v12  ;;  %vm101_vm3 = vcmp.eq.s32.totalorder %v859_v28, %v696_v10  ;;  %vm165_vm12 = vcmp.eq.s32.totalorder %v132_v29, %v693_v8 }
  0x2e   :  { %421 = vmatpush.msk.msra.mxu0 %vm103_vm15, %v640_v12  ;;  %469 = vmatpush.msk.msra.mxu3 %vm103_vm15, %v640_v12  ;;  %vm1119_vm15 = vcmp.eq.s32.totalorder %v761_v18, %v693_v8 }
  0x2f   :  { %454 = vmatpush.msk.msra.mxu2 %vm167_vm10, %v640_v12  ;;  %438 = vmatpush.msk.msra.mxu1 %vm1113_vm8, %v640_v12  ;;  %vm1115_vm10 = vcmp.eq.s32.totalorder %v881_v30, %v693_v8  ;;  %vm164_vm8 = vcmp.eq.s32.totalorder %v131_v31, %v693_v8 }
  0x30   :  { %422 = vmatpush.msk.msra.mxu0 %vm102_vm13, %v640_v12  ;;  %470 = vmatpush.msk.msra.mxu3 %vm102_vm13, %v640_v12  ;;  %vm1121_vm13 = vcmp.eq.s32.totalorder %v801_v22, %v693_v8 }
  0x31   :  { %455 = vmatpush.msk.msra.mxu2 %vm166_vm6, %v640_v12  ;;  %439 = vmatpush.msk.msra.mxu1 %vm1114_vm11, %v640_v12  ;;  %vm99_vm6 = vcmp.eq.s32.totalorder %v903_v32, %v696_v10  ;;  %vm163_vm11 = vcmp.eq.s32.totalorder %v130_v33, %v693_v8 }
  0x32   :  { %423 = vmatpush.msk.msra.mxu0 %vm101_vm3, %v640_v12  ;;  %471 = vmatpush.msk.msra.mxu3 %vm101_vm3, %v640_v12  ;;  %vm1123_vm3 = vcmp.eq.s32.totalorder %v841_v26, %v693_v8 }
  0x33   :  { %456 = vmatpush.msk.msra.mxu2 %vm165_vm12, %v640_v12  ;;  %440 = vmatpush.msk.msra.mxu1 %vm1115_vm10, %v640_v12  ;;  %vm98_vm12 = vcmp.eq.s32.totalorder %v925_v34, %v696_v10  ;;  %vm162_vm10 = vcmp.eq.s32.totalorder %v129_v35, %v693_v8 }
  0x34   :  { %424 = vmatpush.msk.msra.mxu0 %vm100_vm14, %v640_v12  ;;  %472 = vmatpush.msk.msra.mxu3 %vm100_vm14, %v640_v12  ;;  %vm1125_vm14 = vcmp.eq.s32.totalorder %v881_v30, %v693_v8 }
  0x35   :  { %457 = vmatpush.msk.msra.mxu2 %vm164_vm8, %v640_v12  ;;  %441 = vmatpush.msk.msra.mxu1 %vm148_vm1, %v640_v12  ;;  %vm97_vm8 = vcmp.eq.s32.totalorder %v679_v1, %v696_v10 }
  0x36   :  { %425 = vmatpush.msk.msra.mxu0 %vm99_vm6, %v640_v12  ;;  %473 = vmatpush.msk.msra.mxu3 %vm99_vm6, %v640_v12 }
  0x37   :  { %458 = vmatpush.msk.msra.mxu2 %vm163_vm11, %v640_v12  ;;  %442 = vmatpush.msk.msra.mxu1 %vm147_vm9, %v640_v12  ;;  %vm1122_vm11 = vcmp.eq.s32.totalorder %v819_v24, %v693_v8 }
  0x38   :  { %426 = vmatpush.msk.msra.mxu0 %vm98_vm12, %v640_v12  ;;  %474 = vmatpush.msk.msra.mxu3 %vm98_vm12, %v640_v12 }
  0x39   :  { %459 = vmatpush.msk.msra.mxu2 %vm162_vm10, %v640_v12  ;;  %443 = vmatpush.msk.msra.mxu1 %vm146_vm0, %v640_v12  ;;  %vm1124_vm10 = vcmp.eq.s32.totalorder %v859_v28, %v693_v8 }
  0x3a   :  { %341 = vmatmul.f32.vlgmr.msra.gmra.mxu2 %v264_v36  ;;  %297 = vmatmul.f32.vlgmr.msra.gmra.mxu1 %v263_v37 }
  0x3b   :  { %427 = vmatpush.msk.msra.mxu0 %vm97_vm8, %v640_v12  ;;  %475 = vmatpush.msk.msra.mxu3 %vm97_vm8, %v640_v12 }
  0x3c   :  { %235 = vmatmul.f32.vlgmr.msra.gmra.mxu0 %v210_v38  ;;  %256 = vmatmul.f32.vlgmr.msra.gmra.mxu3 %v217_v42 }
  0x3d   :  { %476 = vmatpush.msk.msrb.mxu3 %vm161_vm2, %v640_v12  ;;  %vm1116_vm2 = vcmp.eq.s32.totalorder %v703_v11, %v693_v8 }
  0x3f   :  { %477 = vmatpush.msk.msrb.mxu3 %vm160_vm4, %v640_v12  ;;  %vm1117_vm4 = vcmp.eq.s32.totalorder %v725_v14, %v693_v8 }
  0x41   :  { %478 = vmatpush.msk.msrb.mxu3 %vm159_vm7, %v640_v12  ;;  %vm1118_vm7 = vcmp.eq.s32.totalorder %v743_v16, %v693_v8 }
  0x42   :  { %344 = vmatmul.f32.gmra.mxu2 %v266_v39  ;;  %300 = vmatmul.f32.gmra.mxu1 %v265_v40 }
  0x43   :  { %479 = vmatpush.msk.msrb.mxu3 %vm1116_vm2, %v640_v12 }
  0x44   :  { %238 = vmatmul.f32.gmra.mxu0 %v211_v41  ;;  %259 = vmatmul.f32.gmra.mxu3 %v218_v46 }
  0x45   :  { %480 = vmatpush.msk.msrb.mxu3 %vm1117_vm4, %v640_v12 }
  0x47   :  { %481 = vmatpush.msk.msrb.mxu3 %vm1118_vm7, %v640_v12 }
  0x49   :  { %482 = vmatpush.msk.msrb.mxu3 %vm1119_vm15, %v640_v12 }
  0x4a   :  { %347 = vmatmul.f32.gmra.mxu2 %v268_v43  ;;  %303 = vmatmul.f32.gmra.mxu1 %v267_v44 }
  0x4b   :  { %483 = vmatpush.msk.msrb.mxu3 %vm1120_vm5, %v640_v12 }
  0x4c   :  { %241 = vmatmul.f32.gmra.mxu0 %v212_v45 }
  0x4d   :  { %484 = vmatpush.msk.msrb.mxu3 %vm1121_vm13, %v640_v12 }
  0x4f   :  { %485 = vmatpush.msk.msrb.mxu3 %vm1122_vm11, %v640_v12 }
  0x51   :  { %486 = vmatpush.msk.msrb.mxu3 %vm1123_vm3, %v640_v12 }
  0x52   :  { %350 = vmatmul.f32.gmra.mxu2 %v270_v47  ;;  %306 = vmatmul.f32.gmra.mxu1 %v269_v48 }
  0x53   :  { %487 = vmatpush.msk.msrb.mxu3 %vm1124_vm10, %v640_v12 }
  0x54   :  { %244 = vmatmul.f32.gmra.mxu0 %v213_v49 }
  0x55   :  { %488 = vmatpush.msk.msrb.mxu3 %vm1125_vm14, %v640_v12 }
  0x57   :  { %489 = vmatpush.msk.msrb.mxu3 %vm148_vm1, %v640_v12 }
  0x59   :  { %490 = vmatpush.msk.msrb.mxu3 %vm147_vm9, %v640_v12 }
  0x5a   :  { %353 = vmatmul.f32.gmra.mxu2 %v272_v50  ;;  %309 = vmatmul.f32.gmra.mxu1 %v271_v51 }
  0x5b   :  { %491 = vmatpush.msk.msrb.mxu3 %vm146_vm0, %v640_v12 }
  0x5c   :  { %247 = vmatmul.f32.gmra.mxu0 %v214_v52  ;;  %321 = vmatmul.f32.vlgmr.msrb.gmra.mxu3 %v279_v56 }
  0x62   :  { %356 = vmatmul.f32.gmra.mxu2 %v274_v53  ;;  %312 = vmatmul.f32.gmra.mxu1 %v273_v54 }
  0x64   :  { %250 = vmatmul.f32.gmra.mxu0 %v215_v55 }
  0x6a   :  { %359 = vmatmul.f32.gmra.mxu2 %v276_v57  ;;  %315 = vmatmul.f32.gmra.mxu1 %v275_v58 }
  0x6c   :  { %253 = vmatmul.f32.gmra.mxu0 %v216_v59 }
  0x72   :  { %362 = vmatmul.f32.gmra.mxu2 %v278_v60  ;;  %318 = vmatmul.f32.gmra.mxu1 %v277_v61 }
  0x7a   :  { %365 = vmatmul.f32.gmra.mxu2 %v280_v62 }
  0xb7   :  { %v298_v63 = vpop.f32.mrf.mxu1 }
  0xb9   :  { %v236_v0 = vpop.f32.mrf.mxu0 }
  0xbd   :  { %v342_v2 = vpop.f32.mrf.mxu2 }
  0xbe   :  { %v343_v21 = vadd.f32 %v342_v2, %v298_v63 }
  0xbf   :  { %v301_v3 = vpop.f32.mrf.mxu1  ;;  %v257_v16 = vpop.f32.mrf.mxu3 }
  0xc0   :  { %v369_v26 = vmul.f32 %v343_v21, %v236_v0 }
  0xc1   :  { %v239_v1 = vpop.f32.mrf.mxu0 }
  0xc5   :  { %v345_v4 = vpop.f32.mrf.mxu2 }
  0xc6   :  { %v346_v18 = vadd.f32 %v345_v4, %v301_v3 }
  0xc7   :  { %v304_v5 = vpop.f32.mrf.mxu1  ;;  %v260_v25 = vpop.f32.mrf.mxu3 }
  0xc8   :  { %v370_v23 = vmul.f32 %v346_v18, %v239_v1 }
  0xc9   :  { %v242_v7 = vpop.f32.mrf.mxu0 }
  0xca   :  { %v378_v29 = vadd.f32 %v370_v23, %v369_v26 }
  0xcd   :  { %v348_v6 = vpop.f32.mrf.mxu2 }
  0xce   :  { %v349_v22 = vadd.f32 %v348_v6, %v304_v5 }
  0xcf   :  { %v307_v8 = vpop.f32.mrf.mxu1 }
  0xd0   :  { %v371_v27 = vmul.f32 %v349_v22, %v242_v7 }
  0xd1   :  { %v245_v11 = vpop.f32.mrf.mxu0 }
  0xd2   :  { %v379_v34 = vadd.f32 %v378_v29, %v371_v27 }
  0xd5   :  { %v351_v9 = vpop.f32.mrf.mxu2 }
  0xd6   :  { %v352_v24 = vadd.f32 %v351_v9, %v307_v8 }
  0xd7   :  { %v310_v10 = vpop.f32.mrf.mxu1 }
  0xd8   :  { %v372_v30 = vmul.f32 %v352_v24, %v245_v11 }
  0xd9   :  { %v248_v14 = vpop.f32.mrf.mxu0 }
  0xda   :  { %v380_v38 = vadd.f32 %v379_v34, %v372_v30 }
  0xdd   :  { %v354_v12 = vpop.f32.mrf.mxu2 }
  0xde   :  { %v355_v28 = vadd.f32 %v354_v12, %v310_v10 }
  0xdf   :  { %v313_v13 = vpop.f32.mrf.mxu1  ;;  %v322_v43 = vpop.f32.mrf.mxu3 }
  0xe0   :  { %v373_v35 = vmul.f32 %v355_v28, %v248_v14 }
  0xe1   :  { %v251_v19 = vpop.f32.mrf.mxu0 }
  0xe2   :  { %v381_v41 = vadd.f32 %v380_v38, %v373_v35 }
  0xe5   :  { %v357_v15 = vpop.f32.mrf.mxu2 }
  0xe6   :  { %v358_v31 = vadd.f32 %v357_v15, %v313_v13 }
  0xe7   :  { %v316_v17 = vpop.f32.mrf.mxu1 }
  0xe8   :  { %v374_v39 = vmul.f32 %v358_v31, %v251_v19 }
  0xe9   :  { %v254_v37 = vpop.f32.mrf.mxu0 }
  0xea   :  { %v382_v44 = vadd.f32 %v381_v41, %v374_v39 }
  0xed   :  { %v360_v20 = vpop.f32.mrf.mxu2 }
  0xee   :  { %v361_v36 = vadd.f32 %v360_v20, %v316_v17 }
  0xef   :  { %v319_v32 = vpop.f32.mrf.mxu1 }
  0xf0   :  { %v375_v42 = vmul.f32 %v361_v36, %v254_v37 }
  0xf2   :  { %v383_v47 = vadd.f32 %v382_v44, %v375_v42 }
  0xf5   :  { %v363_v33 = vpop.f32.mrf.mxu2 }
  0xf6   :  { %v364_v40 = vadd.f32 %v363_v33, %v319_v32 }
  0xf8   :  { %v376_v45 = vmul.f32 %v364_v40, %v257_v16 }
  0xfa   :  { %v384_v49 = vadd.f32 %v383_v47, %v376_v45 }
  0xfd   :  { %v366_v46 = vpop.f32.mrf.mxu2 }
  0xfe   :  { %v367_v48 = vadd.f32 %v366_v46, %v322_v43 }
 0x100   :  { %v377_v50 = vmul.f32 %v367_v48, %v260_v25 }
 0x102   :  { %v385_v51 = vadd.f32 %v384_v49, %v377_v50 }
 0x104   :  { %v386_v52 = vrot.slane %v385_v51, 4 }
 0x106   :  { %v387_v53 = vadd.f32 %v386_v52, %v385_v51 }
 0x108   :  { %v388_v54 = vrot.slane %v387_v53, 2 }
 0x10a   :  { %v389_v55 = vadd.f32 %v388_v54, %v387_v53 }
 0x10c   :  { %v390_v56 = vrot.slane %v389_v55, 1 }
 0x10e   :  { %v391_v57 = vadd.f32 %v390_v56, %v389_v55 }
 0x110   :  { %392 = vst [vmem:[#allocation10] sm:$0x1] %v391_v57 }
 0x111   :  { %403 = dma.vmem_to_hbm [thread:$0]  %s399_s3, 16, %s401_s13, [#allocation4]  }
 0x112   :  { %630 = dma.done.wait [#allocation4], 16  }
 0x113   :  { %631 = vsyncadd [#allocation4], 4294967280 }
 0x114   :  { %408 = vsyncpa [#allocation3], 1 }
 0x115   :  { %409 = vsyncpa [#allocation6], 1 }
 0x116   :  { %410 = vsyncpa [#allocation9], 1 }
 0x117   :  { %411 = vsyncpa [#allocation4], 1 }

</bundles_post_ra>
